<compile_context>
chip_gen: v7x
topology: tpu7x:2x2x1
jax: 0.10.0
libtpu: 0.0.40
codegen_flags: <defaults>
</compile_context>

<pallas_src>
import functools

import jax
import jax.numpy as jnp
import numpy as np
from jax import lax
from jax.experimental import pallas as pl
from jax.experimental.pallas import tpu as pltpu

_EPS = float(np.finfo(float).eps)   # 2.220446049250313e-16 (matches torch code)
_LANES = 128
_SUB = 8
_TM_MAX = 4096                      # rows per block; (4096,128) f32 = 2 MiB
_VMEM_LIMIT = 32 * 1024 * 1024      # covers 'none' path double-buffering on v5e


def _round_up(v, m):
    return ((v + m - 1) // m) * m


def _focal_elem(x, t, gamma):
    """Elementwise focal loss (f32 in, f32 out)."""
    p_t = jnp.where(t == 1.0, x, 1.0 - x)
    q = 1.0 - p_t
    g = float(gamma)
    if g.is_integer() and g >= 0:
        gi = int(g)
        if gi == 0:
            w = jnp.ones_like(q)
        else:
            w = q
            for _ in range(gi - 1):      # repeated VPU multiplies (no EUP pow)
                w = w * q
    else:
        # TODO(synk): non-integer gamma falls back to the exp/log pow path.
        w = q ** gamma
    return -w * jnp.log(p_t + jnp.float32(_EPS))


def _rowblock_tree_sum(fl):
    """(tm,128) f32 (tm % 8 == 0) -> (8,128) partial sums.

    Tile-aligned static slices + pairwise VPU adds (log-depth chain); the
    single-vreg cross-lane finish is deferred to a tiny wrapper-side jnp.sum.
    """
    tm = fl.shape[0]
    chunks = [fl[r:r + _SUB, :] for r in range(0, tm, _SUB)]
    while len(chunks) > 1:
        nxt = [a + b for a, b in zip(chunks[0::2], chunks[1::2])]
        if len(chunks) % 2:
            nxt.append(chunks[-1])
        chunks = nxt
    return chunks[0]


def _focal_partial_sum_kernel(x_ref, t_ref, o_ref, *, gamma, rows_valid, tm,
                              nb, need_mask):
    """Each grid step writes an independent (8,128) partial-sum slab."""
    i = pl.program_id(0)
    x = x_ref[...].astype(jnp.float32)
    t = t_ref[...].astype(jnp.float32)
    fl = _focal_elem(x, t, gamma)

    if need_mask:
        # Only the last grid step owns a partial block; gate the mask there so
        # the common path stays a pure load->VPU->store stream.
        def _write_masked():
            sub = lax.broadcasted_iota(jnp.int32, fl.shape, 0)
            row = i * tm + sub                      # row index, no flat overflow
            masked = jnp.where(row < rows_valid, fl, 0.0)
            o_ref[0] = _rowblock_tree_sum(masked)

        def _write_plain():
            o_ref[0] = _rowblock_tree_sum(fl)

        pl.when(i == nb - 1)(_write_masked)
        pl.when(i != nb - 1)(_write_plain)
    else:
        o_ref[0] = _rowblock_tree_sum(fl)


def _focal_none_kernel(x_ref, t_ref, o_ref, *, gamma):
    """Elementwise focal loss, no reduction; f32 math, store in output dtype."""
    x = x_ref[...].astype(jnp.float32)
    t = t_ref[...].astype(jnp.float32)
    o_ref[...] = _focal_elem(x, t, gamma).astype(o_ref.dtype)


def _plan_blocks(rows):
    """Pick (tm, nb, need_mask) for a (rows, 128) view, or None for jnp fallback.

    rows >= 32: tm is a multiple of 32 (legal sublane tiling for f32/bf16/int8
    blocks), capped at 2 MiB/input block, aiming for >= 4 grid steps so v7x's
    two TensorCores both stream.  8 <= rows < 32 (multiple of 8): one
    full-extent block.  Anything smaller/ragged (< 4K elements) -> plain jnp.
    """
    if rows >= 32:
        tm = min(_TM_MAX, max(32, _round_up(pl.cdiv(rows, 4), 32)))
        nb = pl.cdiv(rows, tm)
        return tm, nb, (rows % tm) != 0
    if rows >= _SUB and rows % _SUB == 0:
        return rows, 1, False        # single full-extent block (always legal)
    return None


def focal_loss2(x, target, *, alpha=1, gamma=2, reduction="mean"):
    """JAX/Pallas equivalent of FocalLoss2.forward(x, target)."""
    if reduction not in ("mean", "sum", "none"):
        raise NotImplementedError(f"Reduction {reduction} not implemented.")
    del alpha  # unused by the PyTorch module's forward as well

    orig_shape = x.shape
    n = int(np.prod(orig_shape)) if orig_shape else 1
    out_dtype = x.dtype if jnp.issubdtype(x.dtype, jnp.floating) else jnp.float32

    # Flatten NCHW -> 1-D (metadata-only reshape; no HBM copy, no dtype cast).
    xf = jnp.reshape(x, (-1,))
    tf = jnp.reshape(target, (-1,))

    rows = n // _LANES
    n_tail = n - rows * _LANES
    plan = _plan_blocks(rows)
    if plan is None:
        rows = 0
        n_tail = n
    n_bulk = rows * _LANES

    x2 = t2 = None
    if rows:
        if n_tail:
            # TODO(synk): for lane-ragged sizes this prefix slice is still one
            # copy of each input; a fully copy-free path needs a 1-D manual-DMA
            # kernel.  Lane-aligned sizes (n % 128 == 0) are zero-copy.
            xb, tb = xf[:n_bulk], tf[:n_bulk]
        else:
            xb, tb = xf, tf
        x2 = xb.reshape(rows, _LANES)          # free reshape (contiguous)
        t2 = tb.reshape(rows, _LANES)

    compiler_params = pltpu.CompilerParams(
        dimension_semantics=("parallel",),
        vmem_limit_bytes=_VMEM_LIMIT,
    )

    if reduction == "none":
        pieces = []
        if rows:
            tm, nb, _ = plan
            bulk = pl.pallas_call(
                functools.partial(_focal_none_kernel, gamma=gamma),
                out_shape=jax.ShapeDtypeStruct((rows, _LANES), out_dtype),
                grid_spec=pltpu.PrefetchScalarGridSpec(
                    num_scalar_prefetch=0,
                    grid=(nb,),
                    in_specs=[pl.BlockSpec((tm, _LANES), lambda i: (i, 0)),
                              pl.BlockSpec((tm, _LANES), lambda i: (i, 0))],
                    out_specs=pl.BlockSpec((tm, _LANES), lambda i: (i, 0)),
                ),
                compiler_params=compiler_params,
            )(x2, t2)
            pieces.append(bulk.reshape(-1))
        if n_tail:
            tx = xf[n_bulk:].astype(jnp.float32)
            tt = tf[n_bulk:].astype(jnp.float32)
            pieces.append(_focal_elem(tx, tt, gamma).astype(out_dtype))
        flat = pieces[0] if len(pieces) == 1 else jnp.concatenate(pieces)
        return flat.reshape(orig_shape)

    # 'mean' / 'sum'
    total = jnp.zeros((), jnp.float32)
    if rows:
        tm, nb, need_mask = plan
        partials = pl.pallas_call(
            functools.partial(_focal_partial_sum_kernel, gamma=gamma,
                              rows_valid=rows, tm=tm, nb=nb,
                              need_mask=need_mask),
            out_shape=jax.ShapeDtypeStruct((nb, _SUB, _LANES), jnp.float32),
            grid_spec=pltpu.PrefetchScalarGridSpec(
                num_scalar_prefetch=0,
                grid=(nb,),
                in_specs=[pl.BlockSpec((tm, _LANES), lambda i: (i, 0)),
                          pl.BlockSpec((tm, _LANES), lambda i: (i, 0))],
                out_specs=pl.BlockSpec((1, _SUB, _LANES), lambda i: (i, 0, 0)),
            ),
            compiler_params=compiler_params,
        )(x2, t2)
        total = jnp.sum(partials)              # tiny cross-lane finish in XLA
    if n_tail:
        tx = xf[n_bulk:].astype(jnp.float32)
        tt = tf[n_bulk:].astype(jnp.float32)
        total = total + jnp.sum(_focal_elem(tx, tt, gamma))
    if reduction == "mean":
        total = total * jnp.float32(1.0 / n)
    return total


def _reference(x, target, gamma=2, reduction="mean"):
    xf = x.astype(jnp.float32)
    tf = target.astype(jnp.float32)
    p_t = jnp.where(tf == 1, xf, 1.0 - xf)
    fl = -((1.0 - p_t) ** gamma) * jnp.log(p_t + jnp.float32(_EPS))
    if reduction == "mean":
        return fl.mean()
    if reduction == "sum":
        return fl.sum()
    return fl


if __name__ == "__main__":
    key = jax.random.PRNGKey(0)
    ks = jax.random.split(key, 10)

    # 1) Primary check: NCHW f32 probabilities + f32 binary target (2,4,16,16).
    x = jax.random.uniform(ks[0], (2, 4, 16, 16), dtype=jnp.float32,
                           minval=0.01, maxval=0.99)
    t = (jax.random.uniform(ks[1], (2, 4, 16, 16)) > 0.5).astype(jnp.float32)

    out = jax.block_until_ready(focal_loss2(x, t, gamma=2, reduction="mean"))
    assert jnp.allclose(out, _reference(x, t), rtol=1e-5, atol=1e-6), out

    out_s = jax.block_until_ready(focal_loss2(x, t, reduction="sum"))
    assert jnp.allclose(out_s, _reference(x, t, reduction="sum"),
                        rtol=1e-5, atol=1e-4)

    out_n = jax.block_until_ready(focal_loss2(x, t, reduction="none"))
    assert out_n.shape == x.shape and out_n.dtype == x.dtype
    assert jnp.allclose(out_n, _reference(x, t, reduction="none"),
                        rtol=1e-5, atol=1e-5)

    # 2) Narrow-dtype target passthrough + multi-block parallel grid: int8.
    x2 = jax.random.uniform(ks[2], (2, 4, 32, 64), dtype=jnp.float32,
                            minval=0.01, maxval=0.99)
    t2 = (jax.random.uniform(ks[3], (2, 4, 32, 64)) > 0.5).astype(jnp.int8)
    out2 = jax.block_until_ready(focal_loss2(x2, t2, reduction="mean"))
    assert jnp.allclose(out2, _reference(x2, t2), rtol=1e-5, atol=1e-6), out2

    # 3) Ragged size: multi-block grid with masked partial last block + jnp tail.
    x3 = jax.random.uniform(ks[4], (2, 3, 37, 129), dtype=jnp.float32,
                            minval=0.01, maxval=0.99)
    t3 = (jax.random.uniform(ks[5], (2, 3, 37, 129)) > 0.5).astype(jnp.float32)
    out3 = jax.block_until_ready(focal_loss2(x3, t3, reduction="sum"))
    assert jnp.allclose(out3, _reference(x3, t3, reduction="sum"),
                        rtol=1e-5, atol=1e-3), out3
    out3n = jax.block_until_ready(focal_loss2(x3, t3, reduction="none"))
    assert out3n.shape == x3.shape
    assert jnp.allclose(out3n, _reference(x3, t3, reduction="none"),
                        rtol=1e-5, atol=1e-5)

    # 4) bf16 input -> bf16 'none' output (dtype-preserving writeback).
    xb = x.astype(jnp.bfloat16)
    tb = t.astype(jnp.bfloat16)
    outb = jax.block_until_ready(focal_loss2(xb, tb, reduction="none"))
    assert outb.dtype == jnp.bfloat16 and outb.shape == xb.shape
    assert jnp.allclose(outb.astype(jnp.float32), _reference(xb, tb, reduction="none"),
                        rtol=2e-2, atol=2e-2)

    # 5) Tiny ragged input (< 4K elements): plain-jnp fallback path.
    x5 = jax.random.uniform(ks[6], (3, 5, 7, 11), dtype=jnp.float32,
                            minval=0.01, maxval=0.99)
    t5 = (jax.random.uniform(ks[7], (3, 5, 7, 11)) > 0.5).astype(jnp.float32)
    out5 = jax.block_until_ready(focal_loss2(x5, t5, reduction="sum"))
    assert jnp.allclose(out5, _reference(x5, t5, reduction="sum"),
                        rtol=1e-5, atol=1e-4), out5

    print("KERNEL_OK")
</pallas_src>

<mosaic_0001>
module attributes {stable_mosaic.version = 11 : i64} {
  func.func @_focal_partial_sum_kernel(%arg0: i32, %arg1: memref<16x128xf32, #tpu.memory_space<vmem>>, %arg2: memref<16x128xf32, #tpu.memory_space<vmem>>, %arg3: memref<1x8x128xf32, #tpu.memory_space<vmem>>) attributes {dimension_semantics = [#tpu.dimension_semantics<parallel>], iteration_bounds = array<i64: 1>, scalar_prefetch = 0 : i64, scratch_operands = 0 : i64, tpu.core_type = #tpu.core_type<tc>, window_params = [{transform_indices = @transform_0, window_bounds = array<i64: 16, 128>}, {transform_indices = @transform_1, window_bounds = array<i64: 16, 128>}, {transform_indices = @transform_2, window_bounds = array<i64: 1, 8, 128>}]} {
    %c0 = arith.constant 0 : index
    %c0_0 = arith.constant 0 : index
    %0 = vector.load %arg1[%c0, %c0_0] : memref<16x128xf32, #tpu.memory_space<vmem>>, vector<16x128xf32>
    %c0_1 = arith.constant 0 : index
    %c0_2 = arith.constant 0 : index
    %1 = vector.load %arg2[%c0_1, %c0_2] : memref<16x128xf32, #tpu.memory_space<vmem>>, vector<16x128xf32>
    %cst = arith.constant 1.000000e+00 : f32
    %2 = vector.broadcast %cst : f32 to vector<16x128xf32>
    %3 = arith.cmpf oeq, %1, %2 : vector<16x128xf32>
    %cst_3 = arith.constant 1.000000e+00 : f32
    %4 = vector.broadcast %cst_3 : f32 to vector<16x128xf32>
    %5 = arith.subf %4, %0 : vector<16x128xf32>
    %6 = arith.select %3, %0, %5 : vector<16x128xi1>, vector<16x128xf32>
    %cst_4 = arith.constant 1.000000e+00 : f32
    %7 = vector.broadcast %cst_4 : f32 to vector<16x128xf32>
    %8 = arith.subf %7, %6 : vector<16x128xf32>
    %9 = arith.mulf %8, %8 : vector<16x128xf32>
    %cst_5 = arith.constant 0.000000e+00 : f32
    %10 = vector.broadcast %cst_5 : f32 to vector<16x128xf32>
    %11 = arith.subf %10, %9 : vector<16x128xf32>
    %cst_6 = arith.constant 2.22044605E-16 : f32
    %12 = vector.broadcast %cst_6 : f32 to vector<16x128xf32>
    %13 = arith.addf %6, %12 : vector<16x128xf32>
    %14 = math.log %13 : vector<16x128xf32>
    %15 = arith.mulf %11, %14 : vector<16x128xf32>
    %16 = vector.extract_strided_slice %15 {offsets = [0, 0], sizes = [8, 128], strides = [1, 1]} : vector<16x128xf32> to vector<8x128xf32>
    %17 = vector.extract_strided_slice %15 {offsets = [8, 0], sizes = [8, 128], strides = [1, 1]} : vector<16x128xf32> to vector<8x128xf32>
    %18 = arith.addf %16, %17 : vector<8x128xf32>
    %c0_7 = arith.constant 0 : index
    %c0_8 = arith.constant 0 : index
    %c0_9 = arith.constant 0 : index
    %19 = vector.load %arg3[%c0_7, %c0_8, %c0_9] : memref<1x8x128xf32, #tpu.memory_space<vmem>>, vector<1x8x128xf32>
    %20 = vector.shape_cast %19 : vector<1x8x128xf32> to vector<8x128xf32>
    %21 = vector.shape_cast %18 : vector<8x128xf32> to vector<1x8x128xf32>
    tpu.vector_store %arg3[%c0_7, %c0_8, %c0_9], %21 {strides = array<i32>} : memref<1x8x128xf32, #tpu.memory_space<vmem>>, vector<1x8x128xf32>,
    return
  }
  func.func @transform_0(%arg0: i32) -> (i32, i32) {
    %c0_i32 = arith.constant 0 : i32
    %c0_i32_0 = arith.constant 0 : i32
    return %arg0, %c0_i32 : i32, i32
  }
  func.func @transform_1(%arg0: i32) -> (i32, i32) {
    %c0_i32 = arith.constant 0 : i32
    %c0_i32_0 = arith.constant 0 : i32
    return %arg0, %c0_i32 : i32, i32
  }
  func.func @transform_2(%arg0: i32) -> (i32, i32, i32) {
    %c0_i32 = arith.constant 0 : i32
    %c0_i32_0 = arith.constant 0 : i32
    %c0_i32_1 = arith.constant 0 : i32
    return %arg0, %c0_i32, %c0_i32_0 : i32, i32, i32
  }
}

</mosaic_0001>

<bundles_post_ra>
// kernel: tpu_custom_call.1
= control target key start
LH: loop header
LB: loop body
LE: loop exit
PB: predicated region body
PF: predicated region fallthrough
CT: control target
= control target key end

     0   :  { %7 = vsyncpa [#allocation3], 0  ;;  %s219_s0 = inlined_call_operand.hbm [shape: f32[16,128], index: 0, kind: input, shape index: {}]   ;;  %s220_s1 = inlined_call_operand.hbm [shape: f32[16,128], index: 1, kind: input, shape index: {}]   ;;  %s221_s2 = inlined_call_operand.hbm [shape: f32[1,8,128], index: 2, kind: output, shape index: {}]  }
   0x1   :  { %8 = vsyncpa [#allocation6], 0 }
   0x2   :  { %9 = vsyncpa [#allocation4], 0  ;;  %s163_s9 = smov [#allocation2]   ;;  %s91_s13 = scalar_lea.hbm %s219_s0, 256 }
   0x3   :  { %s15_s10 = sshll.u32 %s163_s9, 4  ;;  %p92_p0 = scmp.ne.s32.totalorder %s219_s0, %s91_s13  ;;  %s16_s10 = int_to_ptr.vmem [resolvable:$true] %s15_s10 }
   0x4   :  { %p95_p1 = scmp.lt.u32.totalorder %s91_s13, %s219_s0 }
   0x6   :  { %p97_p2 = pnand %p95_p1, %p92_p0 }
   0x8   :  { %100 = shalt.err (!%p97_p2)
}
   0x9   :  { %s101_s18 = scalar_lea.vmem %s16_s10, 256  ;;  %p106_p4 = scmp.lt.s32.totalorder %s16_s10, %s16_s10 }
   0xa   :  { %p102_p3 = scmp.ne.s32.totalorder %s16_s10, %s101_s18  ;;  %p107_p5 = scmp.lt.s32.totalorder %s101_s18, %s101_s18 }
   0xc   :  { %p108_p6 = por %p107_p5, %p106_p4 }
   0xe   :  { %p109_p7 = pnand %p108_p6, %p102_p3 }
  0x10   :  { %112 = shalt.err (!%p109_p7)
}
  0x11   :  { %s164_s19 = smov 128   ;;  %s165_s20 = smov 8  }
  0x12   :  { %21 = dma.hbm_to_vmem [thread:$0]  %s219_s0, 256, %s16_s10, [#allocation3], %s164_s19, %s164_s19, %s165_s20  }
  0x13   :  { %s166_s23 = smov [#allocation5]   ;;  %s113_s27 = scalar_lea.hbm %s220_s1, 256 }
  0x14   :  { %s27_s24 = sshll.u32 %s166_s23, 4  ;;  %p114_p8 = scmp.ne.s32.totalorder %s220_s1, %s113_s27  ;;  %s28_s24 = int_to_ptr.vmem [resolvable:$true] %s27_s24 }
  0x15   :  { %p117_p9 = scmp.lt.u32.totalorder %s113_s27, %s220_s1 }
  0x17   :  { %p119_p10 = pnand %p117_p9, %p114_p8 }
  0x19   :  { %122 = shalt.err (!%p119_p10)
}
  0x1a   :  { %s123_s4 = scalar_lea.vmem %s28_s24, 256  ;;  %p128_p12 = scmp.lt.s32.totalorder %s28_s24, %s28_s24 }
  0x1b   :  { %p124_p11 = scmp.ne.s32.totalorder %s28_s24, %s123_s4  ;;  %p129_p13 = scmp.lt.s32.totalorder %s123_s4, %s123_s4 }
  0x1d   :  { %p130_p0 = por %p129_p13, %p128_p12 }
  0x1f   :  { %p131_p1 = pnand %p130_p0, %p124_p11 }
  0x21   :  { %134 = shalt.err (!%p131_p1)
}
  0x22   :  { %33 = dma.hbm_to_vmem [thread:$0]  %s220_s1, 256, %s28_s24, [#allocation6], %s164_s19, %s164_s19, %s165_s20  }
  0x23   :  { %157 = dma.done.wait [#allocation3], 256  }
  0x24   :  { %158 = vsyncadd [#allocation3], 4294967040 }
  0x25   :  { %159 = dma.done.wait [#allocation6], 256  }
  0x26   :  { %160 = vsyncadd [#allocation6], 4294967040  ;;  %v40_v0 = vld [vmem:[#allocation2] sm:$0xff]  ;;  %v41_v1 = vld [vmem:[#allocation2 + $0x8] sm:$0xff]  ;;  %s167_s1 = smov [#allocation7]  }
  0x27   :  { %v42_v2 = vld [vmem:[#allocation5] sm:$0xff]  ;;  %v43_v3 = vld [vmem:[#allocation5 + $0x8] sm:$0xff]  ;;  %v46_v4 = vsub.f32 1.0, %v40_v0  ;;  %v47_v5 = vsub.f32 1.0, %v41_v1  ;;  %s72_s6 = sshll.u32 %s167_s1, 4  ;;  %s73_s6 = int_to_ptr.vmem [resolvable:$true] %s72_s6 }
  0x28   :  { %vm44_vm0 = vcmp.eq.f32.partialorder %v42_v2, 1.0  ;;  %vm45_vm1 = vcmp.eq.f32.partialorder %v43_v3, 1.0  ;;  %s135_s7 = scalar_lea.vmem %s73_s6, 128  ;;  %p140_p3 = scmp.lt.s32.totalorder %s73_s6, %s73_s6 }
  0x29   :  { %v48_v6 = vsel %vm44_vm0, %v40_v0, %v46_v4  ;;  %v49_v7 = vsel %vm45_vm1, %v41_v1, %v47_v5  ;;  %p136_p2 = scmp.ne.s32.totalorder %s73_s6, %s135_s7  ;;  %p141_p4 = scmp.lt.s32.totalorder %s135_s7, %s135_s7 }
  0x2a   :  { %v56_v8 = vadd.f32 2.220446e-16, %v48_v6  ;;  %v57_v9 = vadd.f32 2.220446e-16, %v49_v7  ;;  %v50_v10 = vsub.f32 1.0, %v48_v6  ;;  %v51_v11 = vsub.f32 1.0, %v49_v7 }
  0x2b   :  { %p142_p5 = por %p141_p4, %p140_p3 }
  0x2c   :  { %87 = vlog2.f32 %v56_v8  ;;  %v52_v12 = vmul.f32 %v50_v10, %v50_v10  ;;  %v53_v13 = vmul.f32 %v51_v11, %v51_v11 }
  0x2d   :  { %89 = vlog2.f32 %v57_v9  ;;  %p143_p6 = pnand %p142_p5, %p136_p2 }
  0x2e   :  { %v54_v14 = vsub.f32 0.0, %v52_v12  ;;  %v55_v16 = vsub.f32 0.0, %v53_v13 }
  0x36   :  { %v88_v15 = vpop.eup %87 }
  0x37   :  { %v90_v17 = vpop.eup %89  ;;  %v59_v18 = vmul.f32 0.6931472, %v88_v15 }
  0x38   :  { %v61_v19 = vmul.f32 0.6931472, %v90_v17 }
  0x39   :  { %v62_v20 = vmul.f32 %v59_v18, %v54_v14 }
  0x3a   :  { %v63_v21 = vmul.f32 %v61_v19, %v55_v16 }
  0x3c   :  { %v64_v22 = vadd.f32 %v63_v21, %v62_v20 }
  0x3e   :  { %65 = vst [vmem:[#allocation7] sm:$0xff] %v64_v22 }
  0x3f   :  { %146 = shalt.err (!%p143_p6)
}
  0x40   :  { %s147_s10 = scalar_lea.hbm %s221_s2, 128 }
  0x41   :  { %p148_p7 = scmp.ne.s32.totalorder %s221_s2, %s147_s10  ;;  %p151_p8 = scmp.lt.u32.totalorder %s147_s10, %s221_s2 }
  0x43   :  { %p153_p9 = pnand %p151_p8, %p148_p7 }
  0x45   :  { %156 = shalt.err (!%p153_p9)
}
  0x46   :  { %75 = dma.vmem_to_hbm [thread:$0]  %s73_s6, 128, %s221_s2, [#allocation4]  }
  0x47   :  { %161 = dma.done.wait [#allocation4], 128  }
  0x48   :  { %162 = vsyncadd [#allocation4], 4294967168 }
  0x49   :  { %79 = vsyncpa [#allocation3], 1 }
  0x4a   :  { %80 = vsyncpa [#allocation6], 1 }
  0x4b   :  { %81 = vsyncpa [#allocation4], 1 }

</bundles_post_ra>
